<compile_context>
chip_gen: v7x
topology: tpu7x:2x2x1
jax: 0.10.0
libtpu: 0.0.40
codegen_flags: <defaults>
</compile_context>

<pallas_src>
import jax
import jax.numpy as jnp
from jax.experimental import pallas as pl
from jax.experimental.pallas import tpu as pltpu


def _make_layer_scale_kernel(fused_fn):
    """Build a kernel that computes fused_fn(x) * scale (fused_fn may be None)."""

    def kernel(x_ref, scale_ref, o_ref):
        x = x_ref[...]
        if fused_fn is not None:
            x = fused_fn(x)                       # elementwise epilogue (EUP/VPU, free)
        o_ref[...] = (x * scale_ref[...]).astype(o_ref.dtype)

    return kernel


def layer_scale_apply(x, scale, *, fused_fn=None,
                      block_bytes_target=4 << 20,
                      vmem_limit_bytes=48 << 20):
    """Compute (fused_fn(x) if fused_fn else x) * scale with a Pallas kernel.

    x: (B, N, D); scale: (1, 1, D).  The D axis is the lane-mapped axis.
    """
    B, N, D = x.shape
    rows = B * N

    x2 = x.reshape(rows, D)
    scale2 = scale.reshape(1, D).astype(x.dtype)

    # --- lane-densify small D: fold row groups into the lane axis ----------
    rows_eff, d_eff = rows, D
    if D < 128 and 128 % D == 0:
        fold = 128 // D
        if rows % fold == 0:
            rows_eff = rows // fold
            d_eff = D * fold
            x2 = x2.reshape(rows_eff, d_eff)
            scale2 = jnp.tile(scale2, (1, fold))

    # --- tile_rows: largest sublane-aligned row block within the VMEM budget
    itemsize = jnp.dtype(x.dtype).itemsize
    sublane = {4: 8, 2: 16, 1: 32}.get(itemsize, 8)
    bytes_per_row = max(d_eff * itemsize, 1)
    rows_budget = max(sublane, block_bytes_target // bytes_per_row)
    rows_budget = (rows_budget // sublane) * sublane
    tile_rows = min(1024, rows_budget)
    if rows_eff <= tile_rows:
        tile_rows = rows_eff                      # full-extent block (always legal)

    grid = (pl.cdiv(rows_eff, tile_rows),)        # ragged last block handled by Pallas

    out2 = pl.pallas_call(
        _make_layer_scale_kernel(fused_fn),
        out_shape=jax.ShapeDtypeStruct((rows_eff, d_eff), x.dtype),
        grid_spec=pltpu.PrefetchScalarGridSpec(
            num_scalar_prefetch=0,
            grid=grid,
            in_specs=[
                pl.BlockSpec((tile_rows, d_eff), lambda i: (i, 0)),
                pl.BlockSpec((1, d_eff), lambda i: (0, 0)),
            ],
            out_specs=pl.BlockSpec((tile_rows, d_eff), lambda i: (i, 0)),
        ),
        compiler_params=pltpu.CompilerParams(
            dimension_semantics=("parallel",),
            vmem_limit_bytes=vmem_limit_bytes,
        ),
    )(x2, scale2)

    return out2.reshape(B, N, D)


class LayerScale:
    """JAX/Pallas port of the PyTorch LayerScale wrapper."""

    def __init__(self, dim, fn, depth, *, fuse_fn=False):
        if depth <= 18:
            init_eps = 0.1
        elif depth <= 24:
            init_eps = 1e-5
        else:
            init_eps = 1e-6
        # Parameter: shape (1, 1, dim), filled with init_eps (deterministic).
        self.scale = jnp.full((1, 1, dim), init_eps, dtype=jnp.float32)
        self.fn = fn
        # Only fuse fn into the kernel when it is a pure elementwise map.
        self.fuse_fn = fuse_fn

    def __call__(self, x, **kwargs):
        if self.fuse_fn and not kwargs:
            # fn's elementwise tail runs inside the kernel -> single HBM pass.
            return layer_scale_apply(x, self.scale, fused_fn=self.fn)
        # Arbitrary (non-elementwise) wrapped module: run it in plain JAX glue,
        # only the broadcasted scale multiply goes through the kernel.
        y = self.fn(x, **kwargs)
        return layer_scale_apply(y, self.scale)


if __name__ == "__main__":
    key = jax.random.PRNGKey(0)
    B, N, D = 2, 8, 32           # batch, seq, hidden dim
    depth = 12                    # -> init_eps = 0.1

    x = jax.random.normal(key, (B, N, D), dtype=jnp.float32)

    # Wrapped fn: an elementwise transform (gelu) standing in for the wrapped
    # sub-module; elementwise -> fused into the Pallas kernel.
    fn = jax.nn.gelu

    module = LayerScale(D, fn, depth, fuse_fn=True)
    out = module(x)
    out = jax.block_until_ready(out)

    # Reference check against plain JAX semantics of the PyTorch forward.
    ref = fn(x) * module.scale
    assert out.shape == (B, N, D)
    assert jnp.allclose(out, ref, atol=1e-5, rtol=1e-5)

    print("KERNEL_OK")
</pallas_src>

<mosaic_0001>
module attributes {stable_mosaic.version = 11 : i64} {
  func.func @kernel(%arg0: i32, %arg1: memref<4x128xf32, #tpu.memory_space<vmem>>, %arg2: memref<1x128xf32, #tpu.memory_space<vmem>>, %arg3: memref<4x128xf32, #tpu.memory_space<vmem>>) attributes {dimension_semantics = [#tpu.dimension_semantics<parallel>], iteration_bounds = array<i64: 1>, scalar_prefetch = 0 : i64, scratch_operands = 0 : i64, tpu.core_type = #tpu.core_type<tc>, window_params = [{transform_indices = @transform_0, window_bounds = array<i64: 4, 128>}, {pipeline_mode = #tpu.pipeline_mode<synchronous>, transform_indices = @transform_1, window_bounds = array<i64: 1, 128>}, {transform_indices = @transform_2, window_bounds = array<i64: 4, 128>}]} {
    %c0 = arith.constant 0 : index
    %c0_0 = arith.constant 0 : index
    %0 = vector.load %arg1[%c0, %c0_0] : memref<4x128xf32, #tpu.memory_space<vmem>>, vector<4x128xf32>
    %1 = arith.mulf %0, %0 : vector<4x128xf32>
    %2 = arith.mulf %0, %1 : vector<4x128xf32>
    %cst = arith.constant 4.471500e-02 : f32
    %3 = vector.broadcast %cst : f32 to vector<4x128xf32>
    %4 = arith.mulf %3, %2 : vector<4x128xf32>
    %5 = arith.addf %0, %4 : vector<4x128xf32>
    %cst_1 = arith.constant 0.797884583 : f32
    %6 = vector.broadcast %cst_1 : f32 to vector<4x128xf32>
    %7 = arith.mulf %6, %5 : vector<4x128xf32>
    %8 = math.tanh %7 : vector<4x128xf32>
    %cst_2 = arith.constant 1.000000e+00 : f32
    %9 = vector.broadcast %cst_2 : f32 to vector<4x128xf32>
    %10 = arith.addf %9, %8 : vector<4x128xf32>
    %cst_3 = arith.constant 5.000000e-01 : f32
    %11 = vector.broadcast %cst_3 : f32 to vector<4x128xf32>
    %12 = arith.mulf %11, %10 : vector<4x128xf32>
    %13 = arith.mulf %0, %12 : vector<4x128xf32>
    %c0_4 = arith.constant 0 : index
    %c0_5 = arith.constant 0 : index
    %14 = vector.load %arg2[%c0_4, %c0_5] : memref<1x128xf32, #tpu.memory_space<vmem>>, vector<1x128xf32>
    %15 = vector.broadcast %14 : vector<1x128xf32> to vector<4x128xf32>
    %16 = arith.mulf %13, %15 : vector<4x128xf32>
    %c0_6 = arith.constant 0 : index
    %c0_7 = arith.constant 0 : index
    %17 = vector.load %arg3[%c0_6, %c0_7] : memref<4x128xf32, #tpu.memory_space<vmem>>, vector<4x128xf32>
    tpu.vector_store %arg3[%c0_6, %c0_7], %16 {strides = array<i32>} : memref<4x128xf32, #tpu.memory_space<vmem>>, vector<4x128xf32>,
    return
  }
  func.func @transform_0(%arg0: i32) -> (i32, i32) {
    %c0_i32 = arith.constant 0 : i32
    %c0_i32_0 = arith.constant 0 : i32
    return %arg0, %c0_i32 : i32, i32
  }
  func.func @transform_1(%arg0: i32) -> (i32, i32) {
    %c0_i32 = arith.constant 0 : i32
    %c0_i32_0 = arith.constant 0 : i32
    %c0_i32_1 = arith.constant 0 : i32
    return %c0_i32, %c0_i32_0 : i32, i32
  }
  func.func @transform_2(%arg0: i32) -> (i32, i32) {
    %c0_i32 = arith.constant 0 : i32
    %c0_i32_0 = arith.constant 0 : i32
    return %arg0, %c0_i32 : i32, i32
  }
}

</mosaic_0001>

<bundles_post_ra>
// kernel: tpu_custom_call.1
= control target key start
LH: loop header
LB: loop body
LE: loop exit
PB: predicated region body
PF: predicated region fallthrough
CT: control target
= control target key end

     0   :  { %7 = vsyncpa [#allocation3], 0  ;;  %s155_s0 = inlined_call_operand.hbm [shape: f32[4,128], index: 0, kind: input, shape index: {}]   ;;  %s156_s1 = inlined_call_operand.vmem [shape: f32[1,128], index: 1, kind: input, shape index: {}]   ;;  %s157_s2 = inlined_call_operand.hbm [shape: f32[4,128], index: 2, kind: output, shape index: {}]  }
   0x1   :  { %8 = vsyncpa [#allocation4], 0  ;;  %s111_s9 = smov [#allocation2]   ;;  %s63_s13 = scalar_lea.hbm %s155_s0, 64 }
   0x2   :  { %s15_s10 = sshll.u32 %s111_s9, 4  ;;  %p64_p0 = scmp.ne.s32.totalorder %s155_s0, %s63_s13  ;;  %s16_s10 = int_to_ptr.vmem [resolvable:$true] %s15_s10 }
   0x3   :  { %p67_p1 = scmp.lt.u32.totalorder %s63_s13, %s155_s0 }
   0x5   :  { %p69_p2 = pnand %p67_p1, %p64_p0 }
   0x7   :  { %72 = shalt.err (!%p69_p2)
}
   0x8   :  { %s73_s18 = scalar_lea.vmem %s16_s10, 64  ;;  %p78_p4 = scmp.lt.s32.totalorder %s16_s10, %s16_s10 }
   0x9   :  { %p74_p3 = scmp.ne.s32.totalorder %s16_s10, %s73_s18  ;;  %p79_p5 = scmp.lt.s32.totalorder %s73_s18, %s73_s18 }
   0xb   :  { %p80_p6 = por %p79_p5, %p78_p4 }
   0xd   :  { %p81_p7 = pnand %p80_p6, %p74_p3 }
   0xf   :  { %84 = shalt.err (!%p81_p7)
}
  0x10   :  { %18 = dma.hbm_to_vmem [thread:$0]  %s155_s0, 64, %s16_s10, [#allocation3]  }
  0x11   :  { %107 = dma.done.wait [#allocation3], 64  }
  0x12   :  { %108 = vsyncadd [#allocation3], 4294967232  ;;  %v24_v0 = vld [vmem:[#allocation2] sm:$0xf]  ;;  %s112_s23 = smov [#allocation5]  }
  0x13   :  { %v25_v1 = vmul.f32 %v24_v0, %v24_v0  ;;  %v58_v9 = vld [vmem:[%s156_s1] ss:$0 sm:$0xff]  ;;  %s49_s24 = sshll.u32 %s112_s23, 4  ;;  %s50_s24 = int_to_ptr.vmem [resolvable:$true] %s49_s24 }
  0x14   :  { %s85_s0 = scalar_lea.vmem %s50_s24, 64  ;;  %p90_p9 = scmp.lt.s32.totalorder %s50_s24, %s50_s24 }
  0x15   :  { %v26_v2 = vmul.f32 %v25_v1, %v24_v0  ;;  %p86_p8 = scmp.ne.s32.totalorder %s50_s24, %s85_s0  ;;  %p91_p10 = scmp.lt.s32.totalorder %s85_s0, %s85_s0 }
  0x17   :  { %v27_v3 = vmul.f32 0.044715, %v26_v2  ;;  %p92_p11 = por %p91_p10, %p90_p9 }
  0x19   :  { %v28_v4 = vadd.f32 %v27_v3, %v24_v0  ;;  %p93_p12 = pnand %p92_p11, %p86_p8 }
  0x1b   :  { %v29_v5 = vmul.f32 0.7978846, %v28_v4 }
  0x1d   :  { %61 = vtanh.f32 %v29_v5 }
  0x27   :  { %v62_v6 = vpop.eup %61 }
  0x28   :  { %v31_v7 = vadd.f32 1.0, %v62_v6 }
  0x2a   :  { %v32_v8 = vmul.f32 0.5, %v31_v7 }
  0x2c   :  { %v33_v10 = vmul.f32 %v32_v8, %v24_v0 }
  0x2e   :  { %v41_v11 = vmul.f32 %v58_v9, %v33_v10 }
  0x30   :  { %42 = vst [vmem:[#allocation5] sm:$0xf] %v41_v11 }
  0x31   :  { %96 = shalt.err (!%p93_p12)
}
  0x32   :  { %s97_s27 = scalar_lea.hbm %s157_s2, 64 }
  0x33   :  { %p98_p13 = scmp.ne.s32.totalorder %s157_s2, %s97_s27  ;;  %p101_p0 = scmp.lt.u32.totalorder %s97_s27, %s157_s2 }
  0x35   :  { %p103_p1 = pnand %p101_p0, %p98_p13 }
  0x37   :  { %106 = shalt.err (!%p103_p1)
}
  0x38   :  { %52 = dma.vmem_to_hbm [thread:$0]  %s50_s24, 64, %s157_s2, [#allocation4]  }
  0x39   :  { %109 = dma.done.wait [#allocation4], 64  }
  0x3a   :  { %110 = vsyncadd [#allocation4], 4294967232 }
  0x3b   :  { %56 = vsyncpa [#allocation3], 1 }
  0x3c   :  { %57 = vsyncpa [#allocation4], 1 }

</bundles_post_ra>
